<compile_context>
chip_gen: v7x
topology: tpu7x:2x2x1
jax: 0.10.0
libtpu: 0.0.40
codegen_flags: <defaults>
</compile_context>

<pallas_src>
import functools

import jax
import jax.numpy as jnp
from jax import lax
from jax.experimental import pallas as pl
from jax.experimental.pallas import tpu as pltpu

HIDDEN = 128
IN_DIM = 3
N_ACTIONS = 2


def _gru_chunk_kernel(gi_ref, h0_ref, w_hh_ref, b_hn_ref, w_head_ref, b_head_ref,
                      q_ref, h_out_ref, h2_ref, *, batch, chunk):
    """One grid step = one chunk of `chunk` timesteps over `batch` rows.

    gi_ref    : (chunk*batch, 3H) f32   precomputed x @ W_ih + merged r/z biases (+ b_ih_n)
    h0_ref    : (batch, H)        f32   initial hidden state (read only at chunk 0)
    w_hh_ref  : (H, 3H)           bf16  GRU hidden weights (resident across grid)
    b_hn_ref  : (1, H)            f32   b_hh_n (must stay inside the r*(...) term)
    w_head_ref: (H, 3)            bf16  [value | adv] fused head weights (resident)
    b_head_ref: (1, 3)            f32
    q_ref     : (chunk*batch, 2)  f32   per-step Q for this chunk (stored once per chunk)
    h_out_ref : (batch, H)        f32   hidden-state carry (resident across grid; final output)
    h2_ref    : (chunk*batch, H)  f32   VMEM scratch holding every h2 of the chunk
    """
    @pl.when(pl.program_id(0) == 0)
    def _():
        h_out_ref[...] = h0_ref[...]

    # Hoist resident weight loads out of the serial loop (JAX does not CSE broadcasts).
    w_hh = w_hh_ref[...]
    b_hn = b_hn_ref[...]

    def step(t, h):
        off = t * batch
        if not isinstance(off, int):              # fori path: alignment hint for pl.ds
            off = pl.multiple_of(off, batch)
        gi = gi_ref[pl.ds(off, batch), :]                                  # (B, 3H) f32
        gh = jnp.dot(h.astype(jnp.bfloat16), w_hh,
                     preferred_element_type=jnp.float32)                   # (B, 3H) MXU
        r = jax.nn.sigmoid(gi[:, 0 * HIDDEN:1 * HIDDEN] + gh[:, 0 * HIDDEN:1 * HIDDEN])
        z = jax.nn.sigmoid(gi[:, 1 * HIDDEN:2 * HIDDEN] + gh[:, 1 * HIDDEN:2 * HIDDEN])
        n = jnp.tanh(gi[:, 2 * HIDDEN:3 * HIDDEN]
                     + r * (gh[:, 2 * HIDDEN:3 * HIDDEN] + b_hn))
        h2 = (1.0 - z) * n + z * h                                         # exact GRUCell
        h2_ref[pl.ds(off, batch), :] = h2        # buffered for the per-chunk head matmul
        return h2

    h = h_out_ref[...]
    if chunk <= 8:
        for t in range(chunk):                   # fully static unroll (Tt <= 8)
            h = step(t, h)
    else:
        h = lax.fori_loop(0, chunk, step, h, unroll=True)
    h_out_ref[...] = h

    # Dueling head: one (chunk*B,128)@(128,3) bf16 MXU pass per chunk instead of
    # one tiny 3-column matmul per timestep.
    head = jnp.dot(h2_ref[...].astype(jnp.bfloat16), w_head_ref[...],
                   preferred_element_type=jnp.float32) + b_head_ref[...]
    v = head[:, 0:1]
    a = head[:, 1:1 + N_ACTIONS]
    a_mean = 0.5 * (a[:, 0:1] + a[:, 1:2])       # closed-form 2-action mean (no XLU reduce)
    q_ref[...] = v + a - a_mean                  # single chunk-dense writeback


def _pick_chunk(T, tt):
    if tt is None:
        tt = min(T, 8)
    tt = max(1, min(tt, T))
    while T % tt != 0:
        tt -= 1
    return tt


def dueling_recurrent_dqn_rollout(xs, h0, params, *, tt=None):
    """Run T GRUCell steps + dueling heads. xs: (T, B, 3), h0: (B, 128)."""
    T, B, _ = xs.shape
    assert B % 8 == 0, "batch must be a multiple of 8 (sublane) for the chunked kernel"
    w_ih, w_hh_bf16, b_i, b_hn, w_head_bf16, b_head = params
    tt = _pick_chunk(T, tt)

    # Input projection hoisted off the serial recurrence (perf review): the K=3
    # contraction + merged biases are embarrassingly parallel over (T, B).
    gi = xs.reshape(T * B, IN_DIM) @ w_ih + b_i                    # (T*B, 3H) f32

    q2d, h_out = pl.pallas_call(
        functools.partial(_gru_chunk_kernel, batch=B, chunk=tt),
        out_shape=(
            jax.ShapeDtypeStruct((T * B, N_ACTIONS), jnp.float32),
            jax.ShapeDtypeStruct((B, HIDDEN), jnp.float32),
        ),
        grid_spec=pltpu.PrefetchScalarGridSpec(
            num_scalar_prefetch=0,
            grid=(T // tt,),
            in_specs=[
                pl.BlockSpec((tt * B, 3 * HIDDEN), lambda c: (c, 0)),      # gi chunk
                pl.BlockSpec((B, HIDDEN), lambda c: (0, 0)),               # h0 (resident)
                pl.BlockSpec((HIDDEN, 3 * HIDDEN), lambda c: (0, 0)),      # w_hh (resident)
                pl.BlockSpec((1, HIDDEN), lambda c: (0, 0)),               # b_hh_n (resident)
                pl.BlockSpec((HIDDEN, 1 + N_ACTIONS), lambda c: (0, 0)),   # w_head (resident)
                pl.BlockSpec((1, 1 + N_ACTIONS), lambda c: (0, 0)),        # b_head (resident)
            ],
            out_specs=(
                pl.BlockSpec((tt * B, N_ACTIONS), lambda c: (c, 0)),       # q chunk
                pl.BlockSpec((B, HIDDEN), lambda c: (0, 0)),               # h carry / final
            ),
            scratch_shapes=[pltpu.VMEM((tt * B, HIDDEN), jnp.float32)],    # h2 buffer
        ),
        compiler_params=pltpu.CompilerParams(
            dimension_semantics=("arbitrary",),   # recurrence: chunks run in order
        ),
    )(gi, h0, w_hh_bf16, b_hn, w_head_bf16, b_head)

    return q2d.reshape(T, B, N_ACTIONS), h_out


def dueling_recurrent_dqn(x, h, params):
    """Single-step API matching the PyTorch module forward(x, h) -> (q, h2)."""
    q_all, h2 = dueling_recurrent_dqn_rollout(x[None], h, params)
    return q_all[0], h2


def init_params(key):
    """Deterministic synthetic parameters (PyTorch-style uniform init ranges),
    stored pre-transposed for the (x @ W) layout."""
    ks = jax.random.split(key, 8)
    k_gru = 1.0 / jnp.sqrt(HIDDEN)
    k_lin = 1.0 / jnp.sqrt(HIDDEN)

    w_ih = jax.random.uniform(ks[0], (IN_DIM, 3 * HIDDEN), jnp.float32, -k_gru, k_gru)
    w_hh = jax.random.uniform(ks[1], (HIDDEN, 3 * HIDDEN), jnp.float32, -k_gru, k_gru)
    b_ih = jax.random.uniform(ks[2], (1, 3 * HIDDEN), jnp.float32, -k_gru, k_gru)
    b_hh = jax.random.uniform(ks[3], (1, 3 * HIDDEN), jnp.float32, -k_gru, k_gru)

    w_value = jax.random.uniform(ks[4], (HIDDEN, 1), jnp.float32, -k_lin, k_lin)
    b_value = jax.random.uniform(ks[5], (1, 1), jnp.float32, -k_lin, k_lin)
    w_adv = jax.random.uniform(ks[6], (HIDDEN, N_ACTIONS), jnp.float32, -k_lin, k_lin)
    b_adv = jax.random.uniform(ks[7], (1, N_ACTIONS), jnp.float32, -k_lin, k_lin)
    w_head = jnp.concatenate([w_value, w_adv], axis=1)
    b_head = jnp.concatenate([b_value, b_adv], axis=1)

    return (w_ih, w_hh, b_ih, b_hh, w_head, b_head)


def prepare_params(raw):
    """Host-side prep: merge r/z biases (b_ih+b_hh), keep b_hh_n separate (it
    stays inside the r*(...) term), cast both MXU weight operands to bf16."""
    w_ih, w_hh, b_ih, b_hh, w_head, b_head = raw
    b_rz = b_ih[:, :2 * HIDDEN] + b_hh[:, :2 * HIDDEN]
    b_i = jnp.concatenate([b_rz, b_ih[:, 2 * HIDDEN:]], axis=1)   # (1, 3H)
    b_hn = b_hh[:, 2 * HIDDEN:]                                   # (1, H)
    return (w_ih, w_hh.astype(jnp.bfloat16), b_i, b_hn,
            w_head.astype(jnp.bfloat16), b_head)


def reference_step(x, h, raw):
    """Pure-JAX f32 reference replicating torch.nn.GRUCell + dueling heads."""
    w_ih, w_hh, b_ih, b_hh, w_head, b_head = raw
    gi = x @ w_ih + b_ih
    gh = h @ w_hh + b_hh
    i_r, i_z, i_n = jnp.split(gi, 3, axis=1)
    h_r, h_z, h_n = jnp.split(gh, 3, axis=1)
    r = jax.nn.sigmoid(i_r + h_r)
    z = jax.nn.sigmoid(i_z + h_z)
    n = jnp.tanh(i_n + r * h_n)
    h2 = (1.0 - z) * n + z * h
    head = h2 @ w_head + b_head
    v = head[:, 0:1]
    a = head[:, 1:1 + N_ACTIONS]
    q = v + a - a.mean(axis=1, keepdims=True)
    return q, h2


if __name__ == "__main__":
    key = jax.random.PRNGKey(0)
    k_params, k_x, k_h = jax.random.split(key, 3)

    T, B = 8, 8   # small rollout length / batch
    raw = init_params(k_params)
    params = prepare_params(raw)
    xs = jax.random.normal(k_x, (T, B, IN_DIM), jnp.float32)
    h0 = jax.random.normal(k_h, (B, HIDDEN), jnp.float32)

    # Fused rollout: tt=4 -> grid=(2,), exercising both the in-chunk unrolled loop
    # and the resident hidden-state carry across chunk boundaries.
    q_all, h_final = dueling_recurrent_dqn_rollout(xs, h0, params, tt=4)
    q_all = jax.block_until_ready(q_all)
    h_final = jax.block_until_ready(h_final)

    # Single-step path (same signature as the PyTorch module forward).
    q1, h1 = dueling_recurrent_dqn(xs[0], h0, params)
    q1 = jax.block_until_ready(q1)
    h1 = jax.block_until_ready(h1)

    # f32 reference rollout (exact PyTorch semantics per step).
    q_ref_steps = []
    h_ref = h0
    for t in range(T):
        q_t, h_ref = reference_step(xs[t], h_ref, raw)
        q_ref_steps.append(q_t)
    q_ref = jnp.stack(q_ref_steps, axis=0)
    q_step0_ref, h_step0_ref = reference_step(xs[0], h0, raw)

    assert q_all.shape == (T, B, N_ACTIONS) and h_final.shape == (B, HIDDEN)
    # bf16 MXU operands (w_hh/w_head) => slightly loosened tolerance vs f32 reference.
    # TODO(synk): re-validate tolerance at production rollout lengths (bf16 drift compounds).
    assert jnp.allclose(q_all, q_ref, atol=2e-2, rtol=2e-2), \
        float(jnp.max(jnp.abs(q_all - q_ref)))
    assert jnp.allclose(h_final, h_ref, atol=2e-2, rtol=2e-2), \
        float(jnp.max(jnp.abs(h_final - h_ref)))
    assert jnp.allclose(q1, q_step0_ref, atol=2e-2, rtol=2e-2)
    assert jnp.allclose(h1, h_step0_ref, atol=2e-2, rtol=2e-2)

    print("KERNEL_OK")
</pallas_src>

<mosaic_0001>
module attributes {stable_mosaic.version = 11 : i64} {
  func.func @_gru_chunk_kernel(%arg0: i32, %arg1: memref<32x384xf32, #tpu.memory_space<vmem>>, %arg2: memref<8x128xf32, #tpu.memory_space<vmem>>, %arg3: memref<128x384xbf16, #tpu.memory_space<vmem>>, %arg4: memref<1x128xf32, #tpu.memory_space<vmem>>, %arg5: memref<128x3xbf16, #tpu.memory_space<vmem>>, %arg6: memref<1x3xf32, #tpu.memory_space<vmem>>, %arg7: memref<32x2xf32, #tpu.memory_space<vmem>>, %arg8: memref<8x128xf32, #tpu.memory_space<vmem>>, %arg9: memref<32x128xf32, #tpu.memory_space<vmem>>) attributes {dimension_semantics = [#tpu.dimension_semantics<arbitrary>], iteration_bounds = array<i64: 2>, scalar_prefetch = 0 : i64, scratch_operands = 1 : i64, tpu.core_type = #tpu.core_type<tc>, window_params = [{transform_indices = @transform_0, window_bounds = array<i64: 32, 384>}, {pipeline_mode = #tpu.pipeline_mode<synchronous>, transform_indices = @transform_1, window_bounds = array<i64: 8, 128>}, {pipeline_mode = #tpu.pipeline_mode<synchronous>, transform_indices = @transform_2, window_bounds = array<i64: 128, 384>}, {pipeline_mode = #tpu.pipeline_mode<synchronous>, transform_indices = @transform_3, window_bounds = array<i64: 1, 128>}, {pipeline_mode = #tpu.pipeline_mode<synchronous>, transform_indices = @transform_4, window_bounds = array<i64: 128, 3>}, {pipeline_mode = #tpu.pipeline_mode<synchronous>, transform_indices = @transform_5, window_bounds = array<i64: 1, 3>}, {transform_indices = @transform_6, window_bounds = array<i64: 32, 2>}, {pipeline_mode = #tpu.pipeline_mode<synchronous>, transform_indices = @transform_7, window_bounds = array<i64: 8, 128>}]} {
    %c0_i32 = arith.constant 0 : i32
    %0 = arith.cmpi eq, %arg0, %c0_i32 : i32
    %1 = arith.extui %0 : i1 to i32
    %c0_i32_0 = arith.constant 0 : i32
    %2 = arith.cmpi ne, %1, %c0_i32_0 : i32
    scf.if %2 {
      %c0_46 = arith.constant 0 : index
      %c0_47 = arith.constant 0 : index
      %154 = vector.load %arg2[%c0_46, %c0_47] : memref<8x128xf32, #tpu.memory_space<vmem>>, vector<8x128xf32>
      %c0_48 = arith.constant 0 : index
      %c0_49 = arith.constant 0 : index
      %155 = vector.load %arg8[%c0_48, %c0_49] : memref<8x128xf32, #tpu.memory_space<vmem>>, vector<8x128xf32>
      tpu.vector_store %arg8[%c0_48, %c0_49], %154 {strides = array<i32>} : memref<8x128xf32, #tpu.memory_space<vmem>>, vector<8x128xf32>,
    } else {
    }
    %c0 = arith.constant 0 : index
    %c0_1 = arith.constant 0 : index
    %3 = vector.load %arg3[%c0, %c0_1] : memref<128x384xbf16, #tpu.memory_space<vmem>>, vector<128x384xbf16>
    %c0_2 = arith.constant 0 : index
    %c0_3 = arith.constant 0 : index
    %4 = vector.load %arg4[%c0_2, %c0_3] : memref<1x128xf32, #tpu.memory_space<vmem>>, vector<1x128xf32>
    %c0_4 = arith.constant 0 : index
    %c0_5 = arith.constant 0 : index
    %5 = vector.load %arg8[%c0_4, %c0_5] : memref<8x128xf32, #tpu.memory_space<vmem>>, vector<8x128xf32>
    %c0_6 = arith.constant 0 : index
    %c0_7 = arith.constant 0 : index
    %6 = vector.load %arg1[%c0_6, %c0_7] : memref<32x384xf32, #tpu.memory_space<vmem>>, vector<8x384xf32>
    %7 = arith.truncf %5 : vector<8x128xf32> to vector<8x128xbf16>
    %cst = arith.constant dense<0.000000e+00> : vector<8x384xf32>
    %8 = tpu.matmul %7, %3, %cst {dimension_numbers = #tpu.dot_dimension_numbers<[1], [0], [0], [1], [0, 0, 1, 1], [], []>} : vector<8x128xbf16>, vector<128x384xbf16>, vector<8x384xf32> -> vector<8x384xf32>
    %9 = vector.extract_strided_slice %6 {offsets = [0, 0], sizes = [8, 128], strides = [1, 1]} : vector<8x384xf32> to vector<8x128xf32>
    %10 = vector.extract_strided_slice %8 {offsets = [0, 0], sizes = [8, 128], strides = [1, 1]} : vector<8x384xf32> to vector<8x128xf32>
    %11 = arith.addf %9, %10 : vector<8x128xf32>
    %12 = arith.negf %11 : vector<8x128xf32>
    %13 = math.exp %12 : vector<8x128xf32>
    %cst_8 = arith.constant 1.000000e+00 : f32
    %14 = vector.broadcast %cst_8 : f32 to vector<8x128xf32>
    %15 = arith.addf %14, %13 : vector<8x128xf32>
    %16 = arith.divf %14, %15 : vector<8x128xf32>
    %17 = vector.extract_strided_slice %6 {offsets = [0, 128], sizes = [8, 128], strides = [1, 1]} : vector<8x384xf32> to vector<8x128xf32>
    %18 = vector.extract_strided_slice %8 {offsets = [0, 128], sizes = [8, 128], strides = [1, 1]} : vector<8x384xf32> to vector<8x128xf32>
    %19 = arith.addf %17, %18 : vector<8x128xf32>
    %20 = arith.negf %19 : vector<8x128xf32>
    %21 = math.exp %20 : vector<8x128xf32>
    %cst_9 = arith.constant 1.000000e+00 : f32
    %22 = vector.broadcast %cst_9 : f32 to vector<8x128xf32>
    %23 = arith.addf %22, %21 : vector<8x128xf32>
    %24 = arith.divf %22, %23 : vector<8x128xf32>
    %25 = vector.extract_strided_slice %6 {offsets = [0, 256], sizes = [8, 128], strides = [1, 1]} : vector<8x384xf32> to vector<8x128xf32>
    %26 = vector.extract_strided_slice %8 {offsets = [0, 256], sizes = [8, 128], strides = [1, 1]} : vector<8x384xf32> to vector<8x128xf32>
    %27 = vector.broadcast %4 : vector<1x128xf32> to vector<8x128xf32>
    %28 = arith.addf %26, %27 : vector<8x128xf32>
    %29 = arith.mulf %16, %28 : vector<8x128xf32>
    %30 = arith.addf %25, %29 : vector<8x128xf32>
    %31 = math.tanh %30 : vector<8x128xf32>
    %cst_10 = arith.constant 1.000000e+00 : f32
    %32 = vector.broadcast %cst_10 : f32 to vector<8x128xf32>
    %33 = arith.subf %32, %24 : vector<8x128xf32>
    %34 = arith.mulf %33, %31 : vector<8x128xf32>
    %35 = arith.mulf %24, %5 : vector<8x128xf32>
    %36 = arith.addf %34, %35 : vector<8x128xf32>
    %c0_11 = arith.constant 0 : index
    %c0_12 = arith.constant 0 : index
    %37 = vector.load %arg9[%c0_11, %c0_12] : memref<32x128xf32, #tpu.memory_space<vmem>>, vector<8x128xf32>
    tpu.vector_store %arg9[%c0_11, %c0_12], %36 {strides = array<i32>} : memref<32x128xf32, #tpu.memory_space<vmem>>, vector<8x128xf32>,
    %c8 = arith.constant 8 : index
    %c0_13 = arith.constant 0 : index
    %38 = vector.load %arg1[%c8, %c0_13] : memref<32x384xf32, #tpu.memory_space<vmem>>, vector<8x384xf32>
    %39 = arith.truncf %36 : vector<8x128xf32> to vector<8x128xbf16>
    %cst_14 = arith.constant dense<0.000000e+00> : vector<8x384xf32>
    %40 = tpu.matmul %39, %3, %cst_14 {dimension_numbers = #tpu.dot_dimension_numbers<[1], [0], [0], [1], [0, 0, 1, 1], [], []>} : vector<8x128xbf16>, vector<128x384xbf16>, vector<8x384xf32> -> vector<8x384xf32>
    %41 = vector.extract_strided_slice %38 {offsets = [0, 0], sizes = [8, 128], strides = [1, 1]} : vector<8x384xf32> to vector<8x128xf32>
    %42 = vector.extract_strided_slice %40 {offsets = [0, 0], sizes = [8, 128], strides = [1, 1]} : vector<8x384xf32> to vector<8x128xf32>
    %43 = arith.addf %41, %42 : vector<8x128xf32>
    %44 = arith.negf %43 : vector<8x128xf32>
    %45 = math.exp %44 : vector<8x128xf32>
    %cst_15 = arith.constant 1.000000e+00 : f32
    %46 = vector.broadcast %cst_15 : f32 to vector<8x128xf32>
    %47 = arith.addf %46, %45 : vector<8x128xf32>
    %48 = arith.divf %46, %47 : vector<8x128xf32>
    %49 = vector.extract_strided_slice %38 {offsets = [0, 128], sizes = [8, 128], strides = [1, 1]} : vector<8x384xf32> to vector<8x128xf32>
    %50 = vector.extract_strided_slice %40 {offsets = [0, 128], sizes = [8, 128], strides = [1, 1]} : vector<8x384xf32> to vector<8x128xf32>
    %51 = arith.addf %49, %50 : vector<8x128xf32>
    %52 = arith.negf %51 : vector<8x128xf32>
    %53 = math.exp %52 : vector<8x128xf32>
    %cst_16 = arith.constant 1.000000e+00 : f32
    %54 = vector.broadcast %cst_16 : f32 to vector<8x128xf32>
    %55 = arith.addf %54, %53 : vector<8x128xf32>
    %56 = arith.divf %54, %55 : vector<8x128xf32>
    %57 = vector.extract_strided_slice %38 {offsets = [0, 256], sizes = [8, 128], strides = [1, 1]} : vector<8x384xf32> to vector<8x128xf32>
    %58 = vector.extract_strided_slice %40 {offsets = [0, 256], sizes = [8, 128], strides = [1, 1]} : vector<8x384xf32> to vector<8x128xf32>
    %59 = vector.broadcast %4 : vector<1x128xf32> to vector<8x128xf32>
    %60 = arith.addf %58, %59 : vector<8x128xf32>
    %61 = arith.mulf %48, %60 : vector<8x128xf32>
    %62 = arith.addf %57, %61 : vector<8x128xf32>
    %63 = math.tanh %62 : vector<8x128xf32>
    %cst_17 = arith.constant 1.000000e+00 : f32
    %64 = vector.broadcast %cst_17 : f32 to vector<8x128xf32>
    %65 = arith.subf %64, %56 : vector<8x128xf32>
    %66 = arith.mulf %65, %63 : vector<8x128xf32>
    %67 = arith.mulf %56, %36 : vector<8x128xf32>
    %68 = arith.addf %66, %67 : vector<8x128xf32>
    %c8_18 = arith.constant 8 : index
    %c0_19 = arith.constant 0 : index
    %69 = vector.load %arg9[%c8_18, %c0_19] : memref<32x128xf32, #tpu.memory_space<vmem>>, vector<8x128xf32>
    tpu.vector_store %arg9[%c8_18, %c0_19], %68 {strides = array<i32>} : memref<32x128xf32, #tpu.memory_space<vmem>>, vector<8x128xf32>,
    %c16 = arith.constant 16 : index
    %c0_20 = arith.constant 0 : index
    %70 = vector.load %arg1[%c16, %c0_20] : memref<32x384xf32, #tpu.memory_space<vmem>>, vector<8x384xf32>
    %71 = arith.truncf %68 : vector<8x128xf32> to vector<8x128xbf16>
    %cst_21 = arith.constant dense<0.000000e+00> : vector<8x384xf32>
    %72 = tpu.matmul %71, %3, %cst_21 {dimension_numbers = #tpu.dot_dimension_numbers<[1], [0], [0], [1], [0, 0, 1, 1], [], []>} : vector<8x128xbf16>, vector<128x384xbf16>, vector<8x384xf32> -> vector<8x384xf32>
    %73 = vector.extract_strided_slice %70 {offsets = [0, 0], sizes = [8, 128], strides = [1, 1]} : vector<8x384xf32> to vector<8x128xf32>
    %74 = vector.extract_strided_slice %72 {offsets = [0, 0], sizes = [8, 128], strides = [1, 1]} : vector<8x384xf32> to vector<8x128xf32>
    %75 = arith.addf %73, %74 : vector<8x128xf32>
    %76 = arith.negf %75 : vector<8x128xf32>
    %77 = math.exp %76 : vector<8x128xf32>
    %cst_22 = arith.constant 1.000000e+00 : f32
    %78 = vector.broadcast %cst_22 : f32 to vector<8x128xf32>
    %79 = arith.addf %78, %77 : vector<8x128xf32>
    %80 = arith.divf %78, %79 : vector<8x128xf32>
    %81 = vector.extract_strided_slice %70 {offsets = [0, 128], sizes = [8, 128], strides = [1, 1]} : vector<8x384xf32> to vector<8x128xf32>
    %82 = vector.extract_strided_slice %72 {offsets = [0, 128], sizes = [8, 128], strides = [1, 1]} : vector<8x384xf32> to vector<8x128xf32>
    %83 = arith.addf %81, %82 : vector<8x128xf32>
    %84 = arith.negf %83 : vector<8x128xf32>
    %85 = math.exp %84 : vector<8x128xf32>
    %cst_23 = arith.constant 1.000000e+00 : f32
    %86 = vector.broadcast %cst_23 : f32 to vector<8x128xf32>
    %87 = arith.addf %86, %85 : vector<8x128xf32>
    %88 = arith.divf %86, %87 : vector<8x128xf32>
    %89 = vector.extract_strided_slice %70 {offsets = [0, 256], sizes = [8, 128], strides = [1, 1]} : vector<8x384xf32> to vector<8x128xf32>
    %90 = vector.extract_strided_slice %72 {offsets = [0, 256], sizes = [8, 128], strides = [1, 1]} : vector<8x384xf32> to vector<8x128xf32>
    %91 = vector.broadcast %4 : vector<1x128xf32> to vector<8x128xf32>
    %92 = arith.addf %90, %91 : vector<8x128xf32>
    %93 = arith.mulf %80, %92 : vector<8x128xf32>
    %94 = arith.addf %89, %93 : vector<8x128xf32>
    %95 = math.tanh %94 : vector<8x128xf32>
    %cst_24 = arith.constant 1.000000e+00 : f32
    %96 = vector.broadcast %cst_24 : f32 to vector<8x128xf32>
    %97 = arith.subf %96, %88 : vector<8x128xf32>
    %98 = arith.mulf %97, %95 : vector<8x128xf32>
    %99 = arith.mulf %88, %68 : vector<8x128xf32>
    %100 = arith.addf %98, %99 : vector<8x128xf32>
    %c16_25 = arith.constant 16 : index
    %c0_26 = arith.constant 0 : index
    %101 = vector.load %arg9[%c16_25, %c0_26] : memref<32x128xf32, #tpu.memory_space<vmem>>, vector<8x128xf32>
    tpu.vector_store %arg9[%c16_25, %c0_26], %100 {strides = array<i32>} : memref<32x128xf32, #tpu.memory_space<vmem>>, vector<8x128xf32>,
    %c24 = arith.constant 24 : index
    %c0_27 = arith.constant 0 : index
    %102 = vector.load %arg1[%c24, %c0_27] : memref<32x384xf32, #tpu.memory_space<vmem>>, vector<8x384xf32>
    %103 = arith.truncf %100 : vector<8x128xf32> to vector<8x128xbf16>
    %cst_28 = arith.constant dense<0.000000e+00> : vector<8x384xf32>
    %104 = tpu.matmul %103, %3, %cst_28 {dimension_numbers = #tpu.dot_dimension_numbers<[1], [0], [0], [1], [0, 0, 1, 1], [], []>} : vector<8x128xbf16>, vector<128x384xbf16>, vector<8x384xf32> -> vector<8x384xf32>
    %105 = vector.extract_strided_slice %102 {offsets = [0, 0], sizes = [8, 128], strides = [1, 1]} : vector<8x384xf32> to vector<8x128xf32>
    %106 = vector.extract_strided_slice %104 {offsets = [0, 0], sizes = [8, 128], strides = [1, 1]} : vector<8x384xf32> to vector<8x128xf32>
    %107 = arith.addf %105, %106 : vector<8x128xf32>
    %108 = arith.negf %107 : vector<8x128xf32>
    %109 = math.exp %108 : vector<8x128xf32>
    %cst_29 = arith.constant 1.000000e+00 : f32
    %110 = vector.broadcast %cst_29 : f32 to vector<8x128xf32>
    %111 = arith.addf %110, %109 : vector<8x128xf32>
    %112 = arith.divf %110, %111 : vector<8x128xf32>
    %113 = vector.extract_strided_slice %102 {offsets = [0, 128], sizes = [8, 128], strides = [1, 1]} : vector<8x384xf32> to vector<8x128xf32>
    %114 = vector.extract_strided_slice %104 {offsets = [0, 128], sizes = [8, 128], strides = [1, 1]} : vector<8x384xf32> to vector<8x128xf32>
    %115 = arith.addf %113, %114 : vector<8x128xf32>
    %116 = arith.negf %115 : vector<8x128xf32>
    %117 = math.exp %116 : vector<8x128xf32>
    %cst_30 = arith.constant 1.000000e+00 : f32
    %118 = vector.broadcast %cst_30 : f32 to vector<8x128xf32>
    %119 = arith.addf %118, %117 : vector<8x128xf32>
    %120 = arith.divf %118, %119 : vector<8x128xf32>
    %121 = vector.extract_strided_slice %102 {offsets = [0, 256], sizes = [8, 128], strides = [1, 1]} : vector<8x384xf32> to vector<8x128xf32>
    %122 = vector.extract_strided_slice %104 {offsets = [0, 256], sizes = [8, 128], strides = [1, 1]} : vector<8x384xf32> to vector<8x128xf32>
    %123 = vector.broadcast %4 : vector<1x128xf32> to vector<8x128xf32>
    %124 = arith.addf %122, %123 : vector<8x128xf32>
    %125 = arith.mulf %112, %124 : vector<8x128xf32>
    %126 = arith.addf %121, %125 : vector<8x128xf32>
    %127 = math.tanh %126 : vector<8x128xf32>
    %cst_31 = arith.constant 1.000000e+00 : f32
    %128 = vector.broadcast %cst_31 : f32 to vector<8x128xf32>
    %129 = arith.subf %128, %120 : vector<8x128xf32>
    %130 = arith.mulf %129, %127 : vector<8x128xf32>
    %131 = arith.mulf %120, %100 : vector<8x128xf32>
    %132 = arith.addf %130, %131 : vector<8x128xf32>
    %c24_32 = arith.constant 24 : index
    %c0_33 = arith.constant 0 : index
    %133 = vector.load %arg9[%c24_32, %c0_33] : memref<32x128xf32, #tpu.memory_space<vmem>>, vector<8x128xf32>
    tpu.vector_store %arg9[%c24_32, %c0_33], %132 {strides = array<i32>} : memref<32x128xf32, #tpu.memory_space<vmem>>, vector<8x128xf32>,
    %c0_34 = arith.constant 0 : index
    %c0_35 = arith.constant 0 : index
    %134 = vector.load %arg8[%c0_34, %c0_35] : memref<8x128xf32, #tpu.memory_space<vmem>>, vector<8x128xf32>
    tpu.vector_store %arg8[%c0_34, %c0_35], %132 {strides = array<i32>} : memref<8x128xf32, #tpu.memory_space<vmem>>, vector<8x128xf32>,
    %c0_36 = arith.constant 0 : index
    %c0_37 = arith.constant 0 : index
    %135 = vector.load %arg9[%c0_36, %c0_37] : memref<32x128xf32, #tpu.memory_space<vmem>>, vector<32x128xf32>
    %136 = arith.truncf %135 : vector<32x128xf32> to vector<32x128xbf16>
    %c0_38 = arith.constant 0 : index
    %c0_39 = arith.constant 0 : index
    %137 = vector.load %arg5[%c0_38, %c0_39] : memref<128x3xbf16, #tpu.memory_space<vmem>>, vector<128x3xbf16>
    %cst_40 = arith.constant dense<0.000000e+00> : vector<32x3xf32>
    %138 = tpu.matmul %136, %137, %cst_40 {dimension_numbers = #tpu.dot_dimension_numbers<[1], [0], [0], [1], [0, 0, 1, 1], [], []>} : vector<32x128xbf16>, vector<128x3xbf16>, vector<32x3xf32> -> vector<32x3xf32>
    %c0_41 = arith.constant 0 : index
    %c0_42 = arith.constant 0 : index
    %139 = vector.load %arg6[%c0_41, %c0_42] : memref<1x3xf32, #tpu.memory_space<vmem>>, vector<1x3xf32>
    %140 = vector.broadcast %139 : vector<1x3xf32> to vector<32x3xf32>
    %141 = arith.addf %138, %140 : vector<32x3xf32>
    %142 = vector.extract_strided_slice %141 {offsets = [0, 0], sizes = [32, 1], strides = [1, 1]} : vector<32x3xf32> to vector<32x1xf32>
    %143 = vector.extract_strided_slice %141 {offsets = [0, 1], sizes = [32, 2], strides = [1, 1]} : vector<32x3xf32> to vector<32x2xf32>
    %144 = vector.extract_strided_slice %143 {offsets = [0, 0], sizes = [32, 1], strides = [1, 1]} : vector<32x2xf32> to vector<32x1xf32>
    %145 = vector.extract_strided_slice %143 {offsets = [0, 1], sizes = [32, 1], strides = [1, 1]} : vector<32x2xf32> to vector<32x1xf32>
    %146 = arith.addf %144, %145 : vector<32x1xf32>
    %cst_43 = arith.constant 5.000000e-01 : f32
    %147 = vector.broadcast %cst_43 : f32 to vector<32x1xf32>
    %148 = arith.mulf %147, %146 : vector<32x1xf32>
    %149 = vector.broadcast %142 : vector<32x1xf32> to vector<32x2xf32>
    %150 = arith.addf %149, %143 : vector<32x2xf32>
    %151 = vector.broadcast %148 : vector<32x1xf32> to vector<32x2xf32>
    %152 = arith.subf %150, %151 : vector<32x2xf32>
    %c0_44 = arith.constant 0 : index
    %c0_45 = arith.constant 0 : index
    %153 = vector.load %arg7[%c0_44, %c0_45] : memref<32x2xf32, #tpu.memory_space<vmem>>, vector<32x2xf32>
    tpu.vector_store %arg7[%c0_44, %c0_45], %152 {strides = array<i32>} : memref<32x2xf32, #tpu.memory_space<vmem>>, vector<32x2xf32>,
    return
  }
  func.func @transform_0(%arg0: i32) -> (i32, i32) {
    %c0_i32 = arith.constant 0 : i32
    %c0_i32_0 = arith.constant 0 : i32
    return %arg0, %c0_i32 : i32, i32
  }
  func.func @transform_1(%arg0: i32) -> (i32, i32) {
    %c0_i32 = arith.constant 0 : i32
    %c0_i32_0 = arith.constant 0 : i32
    %c0_i32_1 = arith.constant 0 : i32
    return %c0_i32, %c0_i32_0 : i32, i32
  }
  func.func @transform_2(%arg0: i32) -> (i32, i32) {
    %c0_i32 = arith.constant 0 : i32
    %c0_i32_0 = arith.constant 0 : i32
    %c0_i32_1 = arith.constant 0 : i32
    return %c0_i32, %c0_i32_0 : i32, i32
  }
  func.func @transform_3(%arg0: i32) -> (i32, i32) {
    %c0_i32 = arith.constant 0 : i32
    %c0_i32_0 = arith.constant 0 : i32
    %c0_i32_1 = arith.constant 0 : i32
    return %c0_i32, %c0_i32_0 : i32, i32
  }
  func.func @transform_4(%arg0: i32) -> (i32, i32) {
    %c0_i32 = arith.constant 0 : i32
    %c0_i32_0 = arith.constant 0 : i32
    %c0_i32_1 = arith.constant 0 : i32
    return %c0_i32, %c0_i32_0 : i32, i32
  }
  func.func @transform_5(%arg0: i32) -> (i32, i32) {
    %c0_i32 = arith.constant 0 : i32
    %c0_i32_0 = arith.constant 0 : i32
    %c0_i32_1 = arith.constant 0 : i32
    return %c0_i32, %c0_i32_0 : i32, i32
  }
  func.func @transform_6(%arg0: i32) -> (i32, i32) {
    %c0_i32 = arith.constant 0 : i32
    %c0_i32_0 = arith.constant 0 : i32
    return %arg0, %c0_i32 : i32, i32
  }
  func.func @transform_7(%arg0: i32) -> (i32, i32) {
    %c0_i32 = arith.constant 0 : i32
    %c0_i32_0 = arith.constant 0 : i32
    %c0_i32_1 = arith.constant 0 : i32
    return %c0_i32, %c0_i32_0 : i32, i32
  }
}

</mosaic_0001>

<bundles_post_ra>
// kernel: tpu_custom_call.1
= control target key start
LH: loop header
LB: loop body
LE: loop exit
PB: predicated region body
PF: predicated region fallthrough
CT: control target
= control target key end

     0   :  { %13 = vsyncpa [#allocation4], 0  ;;  %s2231_s0 = inlined_call_operand.hbm [shape: f32[64,384], index: 0, kind: input, shape index: {}]   ;;  %s2232_s1 = inlined_call_operand.vmem [shape: f32[8,128], index: 1, kind: input, shape index: {}]   ;;  %s2233_s2 = inlined_call_operand.hbm [shape: bf16[128,384], index: 2, kind: input, shape index: {}]   ;;  %s2234_s3 = inlined_call_operand.vmem [shape: f32[1,128], index: 3, kind: input, shape index: {}]   ;;  %s2235_s4 = inlined_call_operand.vmem [shape: bf16[128,3], index: 4, kind: input, shape index: {}]   ;;  %s2236_s5 = inlined_call_operand.vmem [shape: f32[1,3], index: 5, kind: input, shape index: {}]   ;;  %s2237_s6 = inlined_call_operand.vmem [shape: f32[64,2], index: 6, kind: output, shape index: {0}]   ;;  %s2238_s7 = inlined_call_operand.hbm [shape: f32[8,128], index: 7, kind: output, shape index: {1}]  }
   0x1   :  { %15 = vsyncpa [#allocation4 + $0x1], 0 }
   0x2   :  { %16 = vsyncpa [#allocation7], 0 }
   0x3   :  { %17 = vsyncpa [#allocation5], 0  ;;  %s1778_s24 = smov 0   ;;  %s1780_s25 = smov 0  }
   0x4   :  { %s1782_s26 = smov 0   ;;  %s1784_s27 = smov 0  }
   0x5 LB: > { %s1797_s28 = sadd.s32 4294967295, %s1724_s27   ;;  %p43_p0 = scmp.ne.s32.totalorder %s1716_s25, %s1712_s24  ;;  %s1724_s27 = sphi %s1784_s27, %s2254_s27   ;;  %s1720_s26 = sphi %s1782_s26, %s2253_s26   ;;  %s1716_s25 = sphi %s1780_s25, %s2252_s25   ;;  %s1712_s24 = sphi %s1778_s24, %s2251_s24  }
   0x6   : > { %p2239_p1 = scmp.eq.s32.totalorder %s1797_s28, 0  ;;  %p1242_p2 = scmp.ge.s32.totalorder %s1724_s27, 1 }
   0x7   : > { %p206_p3 = scmp.lt.s32.totalorder %s1724_s27, 3  ;;  %s1726_s8 = smov [#allocation6]  }
   0x8   : > { %p1806_p5 = por %p2239_p1, %p43_p0  ;;  %s221_s9 = sshll.u32 %s1726_s8, 4  ;;  %s222_s9 = int_to_ptr.vmem [resolvable:$true] %s221_s9 }
   0x9   : > { %p1810_p6 = pnand %p1242_p2, %p206_p3  ;;  %s1823_s11 = sadd.s32 1, %s1724_s27  }
   0xa   : > { %s2242_s29 = scalar_select %p1806_p5, 1, 0 }
   0xb   : > { %s2243_s30 = scalar_select %p1810_p6, 1, 0 }
   0xc   : > { %p1458_p7 = pneg %p1810_p6  ;;  %s30_s12 = sadd.s32 1, %s1720_s26 }
   0xd   : > { %s27_s13 = ssub.s32 %s1724_s27, %s1823_s11  ;;  %s1598_s16 = scalar_lea.hbm %s2233_s2, 3072 }
   0xe   : > { %p1818_p8 = pnand %p1458_p7, %p2239_p1  ;;  %p1599_p9 = scmp.ne.s32.totalorder %s2233_s2, %s1598_s16 }
   0xf   : > { %p1605_p13 = scmp.lt.u32.totalorder %s1598_s16, %s2233_s2 }
  0x10   : > { %p1600_p10 = pneg %p1818_p8 }
  0x12   : > { %p1601_p11 = pnand %p1600_p10, %p1599_p9 }
  0x14   : > { %p1602_p12 = pneg %p1601_p11 }
  0x16   : > { %p1607_p0 = pnand %p1605_p13, %p1602_p12 }
  0x18   : > { %1610 = shalt.err (!%p1607_p0)
}
  0x19   : > { %s1611_s21 = scalar_lea.vmem %s222_s9, 3072  ;;  %p1619_p4 = scmp.lt.s32.totalorder %s222_s9, %s222_s9 }
  0x1a   : > { %p1612_p2 = scmp.ne.s32.totalorder %s222_s9, %s1611_s21  ;;  %p1620_p1 = scmp.lt.s32.totalorder %s1611_s21, %s1611_s21 }
  0x1c   : > { %p1614_p3 = pnand %p1612_p2, %p1600_p10  ;;  %p1621_p5 = por %p1620_p1, %p1619_p4 }
  0x1e   : > { %p1615_p7 = pneg %p1614_p3 }
  0x20   : > { %p1622_p6 = pnand %p1621_p5, %p1615_p7 }
  0x22   : > { %1625 = shalt.err (!%p1622_p6)
}
  0x23   : > { %s1727_s22 = smov 192   ;;  %s1728_s23 = smov 12  }
  0x24   : > { %1461 = dma.hbm_to_vmem [thread:$0]  (!%p1818_p8), %s2233_s2, 3072, %s222_s9, [#allocation7], %s1727_s22, %s1727_s22, %s1728_s23  }
  0x25   : > { %p28_p9 = scmp.eq.s32.totalorder %s27_s13, 0  ;;  %p37_p10 = scmp.ne.s32.totalorder %s1720_s26, %s1716_s25 }
  0x26   : > { %p38_p1 = scmp.eq.s32.totalorder %s1724_s27, 0  ;;  %p1467_p4 = scmp.lt.s32.totalorder %s1724_s27, 2 }
  0x27   : > { %s1849_s14 = scalar_select %p28_p9, %s1720_s26, %s30_s12  }
  0x28   : > { %p39_p5 = por %p38_p1, %p37_p10  ;;  %s244_s15 = sand.u32 1, %s1720_s26  }
  0x29   : > { %s1445_s16 = smul.u32 96, %s244_s15  ;;  %s1631_s23 = scalar_lea.hbm %s2231_s0, 3072 }
  0x2a   : > { %s1446_s17 = smul.u32 1536, %s1724_s27  ;;  %p1853_p6 = pnand %p1467_p4, %p39_p5 }
  0x2b   : > { %s248_s12 = scalar_lea.vmem [#allocation3], %s1445_s16  ;;  %s1864_s27 = scalar_lea.sflag [#allocation4], %s244_s15 }
  0x2c   : > { %s1860_s9 = scalar_lea.hbm %s2231_s0, %s1446_s17  ;;  %s256_s13 = sshll.u32 %s248_s12, 4  ;;  %s1862_s13 = int_to_ptr.vmem [resolvable:$true] %s256_s13 }
  0x2d   : > { %s1626_s20 = scalar_lea.hbm %s1860_s9, 1536  ;;  %p1628_p11 = pneg %p1853_p6 }
  0x2e   : > { %p1627_p8 = scmp.ne.s32.totalorder %s1860_s9, %s1626_s20  ;;  %p1632_p0 = scmp.lt.u32.totalorder %s1860_s9, %s2231_s0 }
  0x2f   : > { %p1633_p2 = scmp.lt.u32.totalorder %s1631_s23, %s1626_s20  ;;  %p1635_p7 = scmp.lt.u32.totalorder %s1626_s20, %s1860_s9 }
  0x30   : > { %p1629_p12 = pnand %p1628_p11, %p1627_p8 }
  0x31   : > { %p1634_p3 = por %p1633_p2, %p1632_p0 }
  0x32   : > { %p1630_p13 = pneg %p1629_p12 }
  0x33   : > { %p1636_p9 = por %p1635_p7, %p1634_p3 }
  0x35   : > { %p1637_p10 = pnand %p1636_p9, %p1630_p13 }
  0x37   : > { %1640 = shalt.err (!%p1637_p10)
}
  0x38   : > { %s1641_s15 = scalar_lea.vmem %s1862_s13, 1536  ;;  %s1729_s16 = smov [#allocation3]  }
  0x39   : > { %p1642_p1 = scmp.ne.s32.totalorder %s1862_s13, %s1641_s15  ;;  %s1646_s17 = sshll.u32 %s1729_s16, 4  ;;  %s1647_s17 = int_to_ptr.vmem [resolvable:$false] %s1646_s17 }
  0x3a   : > { %s1648_s19 = scalar_lea.vmem %s1647_s17, 3072  ;;  %p1649_p8 = scmp.lt.s32.totalorder %s1862_s13, %s1647_s17 }
  0x3b   : > { %p1644_p4 = pnand %p1642_p1, %p1628_p11  ;;  %p1650_p12 = scmp.lt.s32.totalorder %s1648_s19, %s1641_s15 }
  0x3d   : > { %p1645_p5 = pneg %p1644_p4  ;;  %p1651_p0 = por %p1650_p12, %p1649_p8 }
  0x3f   : > { %p1652_p2 = pnand %p1651_p0, %p1645_p5 }
  0x41   : > { %1655 = shalt.err (!%p1652_p2)
}
  0x42   : > { %s1730_s10 = smov 384   ;;  %s1731_s12 = smov 24  }
  0x43   : > { %1465 = dma.hbm_to_vmem [thread:$0]  (!%p1853_p6), %s1860_s9, 1536, %s1862_s13, %s1864_s27, %s1730_s10, %s1730_s10, %s1731_s12  }
  0x44   : > { %p2246_p11 = scmp.ne.s32.totalorder %s2243_s30, 0 }
  0x45   : > { %s270_s20 = sand.u32 (!%p2246_p11), 1, %s1716_s25   ;;  %p2247_p13 = scmp.ne.s32.totalorder (!%p2246_p11), %s2242_s29, 0 }
  0x46   : > { %268 = sbr.rel (%p2246_p11) target bundleno = 1758 (0x6de), region = 44  ;;  %s271_s22 = scalar_lea.sflag (!%p2246_p11), [#allocation4], %s270_s20 }
  0x47   : > { %s1447_s21 = smul.u32 (!%p2246_p11), 96, %s270_s20 }
  0x49   : > { %s1895_s23 = scalar_lea.vmem (!%p2246_p11), [#allocation3], %s1447_s21 }
  0x4d   : > { %1699 = dma.done.wait (%p2247_p13), %s271_s22, 1536  }
  0x4e   : > { %1701 = vsyncadd (%p2247_p13), %s271_s22, 4294965760  ;;  %p2248_p3 = scmp.eq.s32.totalorder %s1797_s28, 0 }
  0x50   : > { %1703 = dma.done.wait (%p2248_p3), [#allocation7], 3072   ;;  %p2249_p6 = pmov %p2248_p3 }
  0x51   : > { %s1250_s30 = sshll.u32 %s1797_s28, 2  ;;  %p2250_p9 = scmp.ne.s32.totalorder %s1797_s28, 0 }
  0x52   : > { %1705 = vsyncadd (%p2249_p6), [#allocation7], 4294964224  ;;  %p311_p7 = scmp.lt.s32.totalorder %s1250_s30, 7  ;;  %v321_v0 = vld [vmem:[%s2232_s1] sm:$0xff] (!%p2250_p9) }
  0x53   : > { %320 = sbr.rel (%p2250_p9) target bundleno = 90 (0x5a), region = 56  ;;  %322 = vst [vmem:[#allocation8] sm:$0xff] (!%p2250_p9), %v321_v0 }
  0x54   : > { %s2256_s30 = smov (!%p311_p7, %s1250_s30), 7 }
  0x55   : > { %s1251_s18 = sshll.u32 %s2256_s30, 3 }
  0x56   : > { %s1909_s27 = scalar_lea.vmem %s2237_s6, %s1251_s18 }
  0x5a PF: > { %v1916_v1 = vld [vmem:[#allocation6 + $0x4] ss:$12 sps:$4 sm:$0xff]   ;;  %v1918_v2 = vld [vmem:[#allocation6] ss:$12 sps:$4 sm:$0xff]   ;;  %v1732_v3 = vmov 0.0   ;;  %v1733_v4 = vmov 0  }
  0x5b   : > { %1345 = vmatprep.subr.bf16.mxu1 %v1732_v3  ;;  %521 = vmatprep.mubr.bf16.mxu0 %v1733_v4  ;;  %v1923_v5 = vld [vmem:[#allocation6 + $0x1c] ss:$12 sps:$4 sm:$0xff]   ;;  %vm1734_vm0 = vmmov 0   ;;  %v1928_v6 = vld [vmem:[#allocation6 + $0x18] ss:$12 sps:$4 sm:$0xff]   ;;  %v359_v50 = vld [vmem:[%s1895_s23 + $0x10] sm:$0xff] }
  0x5c   : > { %489 = vmatprep.subr.bf16.mxu0 %v1916_v1  ;;  %1361 = vmatprep.mubr.msk.bf16.mxu1 %vm1734_vm0, %v1732_v3  ;;  %v1932_v7 = vld [vmem:[#allocation6 + $0x34] ss:$12 sps:$4 sm:$0xff]   ;;  %v1936_v8 = vld [vmem:[#allocation6 + $0x30] ss:$12 sps:$4 sm:$0xff]   ;;  %v1939_v9 = vld [vmem:[#allocation6 + $0x4c] ss:$12 sps:$4 sm:$0xff]  }
  0x5d   : > { %490 = vmatpush1.bf16.msra.mxu0 %v1918_v2  ;;  %1515 = vset.pattern.permute.xlu1 %v1733_v4  ;;  %v1941_v10 = vld [vmem:[#allocation6 + $0x8] ss:$12 sps:$4 sm:$0xff]   ;;  %v1948_v12 = vld [vmem:[#allocation6 + $0x64] ss:$12 sps:$4 sm:$0xff]   ;;  %v1951_v13 = vld [vmem:[#allocation6 + $0x20] ss:$12 sps:$4 sm:$0xff]  }
  0x5e   : > { %491 = vmatprep.subr.bf16.mxu0 %v1923_v5  ;;  %1514 = vset.pattern.permute.xlu0 %v1733_v4  ;;  %v1944_v11 = vld [vmem:[#allocation6 + $0x48] ss:$12 sps:$4 sm:$0xff]   ;;  %v1953_v14 = vld [vmem:[#allocation6 + $0x60] ss:$12 sps:$4 sm:$0xff]   ;;  %v1957_v15 = vld [vmem:[#allocation6 + $0x38] ss:$12 sps:$4 sm:$0xff]  }
  0x5f   : > { %1346 = vmatpush3.bf16.msra.mxu1 %v1941_v10  ;;  %v1960_v16 = vld [vmem:[#allocation6 + $0x7c] ss:$12 sps:$4 sm:$0xff]   ;;  %v1963_v17 = vld [vmem:[#allocation6 + $0x78] ss:$12 sps:$4 sm:$0xff]   ;;  %v1965_v18 = vld [vmem:[#allocation6 + $0x94] ss:$12 sps:$4 sm:$0xff]  }
  0x60   : > { %1347 = vmatprep.subr.bf16.mxu1 %v1732_v3  ;;  %v1969_v19 = vld [vmem:[#allocation6 + $0x50] ss:$12 sps:$4 sm:$0xff]   ;;  %v1975_v21 = vld [vmem:[#allocation6 + $0x68] ss:$12 sps:$4 sm:$0xff]   ;;  %v1980_v22 = vld [vmem:[#allocation6 + $0xac] ss:$12 sps:$4 sm:$0xff]  }
  0x61   : > { %492 = vmatpush1.bf16.msra.mxu0 %v1928_v6  ;;  %v1973_v20 = vld [vmem:[#allocation6 + $0x90] ss:$12 sps:$4 sm:$0xff]   ;;  %v1984_v23 = vld [vmem:[#allocation6 + $0xa8] ss:$12 sps:$4 sm:$0xff]   ;;  %v1986_v24 = vld [vmem:[#allocation8] sm:$0xff]  ;;  %p1469_p10 = scmp.eq.s32.totalorder %s1797_s28, 1 }
  0x62   : > { %493 = vmatprep.subr.bf16.mxu0 %v1932_v7  ;;  %v1989_v25 = vld [vmem:[#allocation6 + $0x80] ss:$12 sps:$4 sm:$0xff]   ;;  %v360_v26 = vpack.c.bf16 %v1986_v24, %v1986_v24  ;;  %v1997_v27 = vld [vmem:[#allocation6 + $0x98] ss:$12 sps:$4 sm:$0xff]   ;;  %v2002_v28 = vld [vmem:[#allocation6 + $0xb0] ss:$12 sps:$4 sm:$0xff]  }
  0x63   : > { %1348 = vmatpush3.bf16.msra.mxu1 %v1951_v13  ;;  %v357_v29 = vld [vmem:[%s1895_s23] sm:$0xff]  ;;  %v358_v32 = vld [vmem:[%s1895_s23 + $0x8] sm:$0xff]  ;;  %v599_v60 = vld [vmem:[%s1895_s23 + $0x18] sm:$0xff]  ;;  %s1737_s19 = smov [#allocation8]  }
  0x64   : > { %1349 = vmatprep.subr.bf16.mxu1 %v1732_v3  ;;  %v2047_v46 = vld [vmem:[%s2234_s3] ss:$0 sm:$0xff]  ;;  %s1155_s10 = sshll.u32 %s1737_s19, 4  ;;  %s1156_s10 = int_to_ptr.vmem [resolvable:$true] %s1155_s10 }
  0x65   : > { %494 = vmatpush1.bf16.msra.mxu0 %v1936_v8  ;;  %v600_v0 = vld [vmem:[%s1895_s23 + $0x20] sm:$0xff]  ;;  %s1656_s12 = scalar_lea.vmem %s1156_s10, 128  ;;  %p1663_p8 = scmp.lt.s32.totalorder %s1156_s10, %s1156_s10 }
  0x66   : > { %495 = vmatprep.subr.bf16.mxu0 %v1939_v9  ;;  %p1657_p1 = scmp.ne.s32.totalorder %s1156_s10, %s1656_s12  ;;  %p1664_p12 = scmp.lt.s32.totalorder %s1656_s12, %s1656_s12 }
  0x67   : > { %1350 = vmatpush3.bf16.msra.mxu1 %v1957_v15 }
  0x68   : > { %1351 = vmatprep.subr.bf16.mxu1 %v1732_v3  ;;  %p1658_p4 = pnand %p1657_p1, %p1469_p10  ;;  %p1665_p0 = por %p1664_p12, %p1663_p8 }
  0x69   : > { %496 = vmatpush1.bf16.msra.mxu0 %v1944_v11 }
  0x6a   : > { %497 = vmatprep.subr.bf16.mxu0 %v1948_v12  ;;  %p1659_p5 = pneg %p1658_p4 }
  0x6b   : > { %1352 = vmatpush3.bf16.msra.mxu1 %v1969_v19 }
  0x6c   : > { %1353 = vmatprep.subr.bf16.mxu1 %v1732_v3  ;;  %p1666_p2 = pnand %p1665_p0, %p1659_p5 }
  0x6d   : > { %498 = vmatpush1.bf16.msra.mxu0 %v1953_v14 }
  0x6e   : > { %499 = vmatprep.subr.bf16.mxu0 %v1960_v16 }
  0x6f   : > { %1354 = vmatpush3.bf16.msra.mxu1 %v1975_v21 }
  0x70   : > { %1355 = vmatprep.subr.bf16.mxu1 %v1732_v3 }
  0x71   : > { %500 = vmatpush1.bf16.msra.mxu0 %v1963_v17 }
  0x72   : > { %501 = vmatprep.subr.bf16.mxu0 %v1965_v18 }
  0x73   : > { %1356 = vmatpush3.bf16.msra.mxu1 %v1989_v25 }
  0x74   : > { %1357 = vmatprep.subr.bf16.mxu1 %v1732_v3 }
  0x75   : > { %502 = vmatpush1.bf16.msra.mxu0 %v1973_v20 }
  0x76   : > { %503 = vmatprep.subr.bf16.mxu0 %v1980_v22 }
  0x77   : > { %1358 = vmatpush3.bf16.msra.mxu1 %v1997_v27 }
  0x78   : > { %1359 = vmatprep.subr.bf16.mxu1 %v1732_v3 }
  0x79   : > { %504 = vmatpush1.bf16.msra.mxu0 %v1984_v23 }
  0x7a   : > { %603 = vmatprep.subr.bf16.mxu0 %v1916_v1 }
  0x7b   : > { %1360 = vmatpush3.bf16.msra.mxu1 %v2002_v28 }
  0x7c   : > { %522 = vmatmul.mubr.bf16.vlgmr.msra.gmra.mrb[0].mxu0 %v360_v26  ;;  %1365 = vmatprep.subr.bf16.mxu1 %v1732_v3 }
  0x7d   : > { %604 = vmatpush1.bf16.msra.mxu0 %v1918_v2  ;;  %635 = vmatprep.mubr.bf16.mxu0 %v1733_v4 }
  0x7e   : > { %605 = vmatprep.subr.bf16.mxu0 %v1923_v5  ;;  %1362 = vmatmul.mubr.bf16.vlgmr.msra.gmra.mrb[0].mxu1 %v360_v26 }
  0x7f   : > { %1366 = vmatpush3.bf16.msra.mxu1 %v1941_v10  ;;  %1381 = vmatprep.mubr.msk.bf16.mxu1 %vm1734_vm0, %v1732_v3 }
  0x80   : > { %1367 = vmatprep.subr.bf16.mxu1 %v1732_v3 }
  0x81   : > { %606 = vmatpush1.bf16.msra.mxu0 %v1928_v6 }
  0x82   : > { %607 = vmatprep.subr.bf16.mxu0 %v1932_v7 }
  0x83   : > { %1368 = vmatpush3.bf16.msra.mxu1 %v1951_v13 }
  0x84   : > { %1369 = vmatprep.subr.bf16.mxu1 %v1732_v3 }
  0x85   : > { %608 = vmatpush1.bf16.msra.mxu0 %v1936_v8 }
  0x86   : > { %609 = vmatprep.subr.bf16.mxu0 %v1939_v9 }
  0x87   : > { %1370 = vmatpush3.bf16.msra.mxu1 %v1957_v15 }
  0x88   : > { %1371 = vmatprep.subr.bf16.mxu1 %v1732_v3 }
  0x89   : > { %610 = vmatpush1.bf16.msra.mxu0 %v1944_v11 }
  0x8a   : > { %611 = vmatprep.subr.bf16.mxu0 %v1948_v12 }
  0x8b   : > { %1372 = vmatpush3.bf16.msra.mxu1 %v1969_v19 }
  0x8c   : > { %1373 = vmatprep.subr.bf16.mxu1 %v1732_v3 }
  0x8d   : > { %612 = vmatpush1.bf16.msra.mxu0 %v1953_v14 }
  0x8e   : > { %613 = vmatprep.subr.bf16.mxu0 %v1960_v16 }
  0x8f   : > { %1374 = vmatpush3.bf16.msra.mxu1 %v1975_v21 }
  0x90   : > { %1375 = vmatprep.subr.bf16.mxu1 %v1732_v3 }
  0x91   : > { %614 = vmatpush1.bf16.msra.mxu0 %v1963_v17 }
  0x92   : > { %615 = vmatprep.subr.bf16.mxu0 %v1965_v18 }
  0x93   : > { %1376 = vmatpush3.bf16.msra.mxu1 %v1989_v25 }
  0x94   : > { %1377 = vmatprep.subr.bf16.mxu1 %v1732_v3 }
  0x95   : > { %616 = vmatpush1.bf16.msra.mxu0 %v1973_v20 }
  0x96   : > { %617 = vmatprep.subr.bf16.mxu0 %v1980_v22 }
  0x97   : > { %1378 = vmatpush3.bf16.msra.mxu1 %v1997_v27 }
  0x98   : > { %1379 = vmatprep.subr.bf16.mxu1 %v1732_v3 }
  0x99   : > { %618 = vmatpush1.bf16.msra.mxu0 %v1984_v23 }
  0x9a   : > { %711 = vmatprep.subr.bf16.mxu0 %v1916_v1 }
  0x9b   : > { %1380 = vmatpush3.bf16.msra.mxu1 %v2002_v28 }
  0x9c   : > { %1385 = vmatprep.subr.bf16.mxu1 %v1732_v3 }
 0x14f   : > { %v523_v30 = vpop.f32.mrb[0].mxu0 }
 0x150   : > { %v570_v31 = vadd.f32 %v523_v30, %v357_v29  ;;  %v525_v33 = vpop.f32.mrb[1].mxu0 }
 0x151   : > { %v527_v34 = vpop.f32.mrb[2].mxu0  ;;  %v577_v37 = vadd.f32 %v525_v33, %v358_v32  ;;  %v564_v39 = vpop.f32.mrb[0].mxu1 }
 0x152   : > { %v1277_v35 = vmul.f32 -1.442695, %v570_v31  ;;  %v528_v36 = vpop.f32.mrb[3].mxu0  ;;  %v1363_v40 = vpop.f32.mrb[1].mxu1  ;;  %v590_v48 = vadd.f32 %v2047_v46, %v564_v39 }
 0x153   : > { %v1278_v38 = vmul.f32 -1.442695, %v577_v37  ;;  %v567_v41 = vpop.f32.mrb[2].mxu1 }
 0x154   : > { %1558 = vpow2.f32 %v1277_v35  ;;  %v1364_v42 = vpop.f32.mrb[3].mxu1  ;;  %v601_v41 = vld [vmem:[%s1895_s23 + $0x28] sm:$0xff] }
 0x155   : > { %1560 = vpow2.f32 %v1278_v38 }
 0x15e   : > { %v1559_v43 = vpop.eup %1558 }
 0x15f   : > { %v574_v44 = vadd.f32 1.0, %v1559_v43  ;;  %v1561_v45 = vpop.eup %1560 }
 0x160   : > { %v581_v47 = vadd.f32 1.0, %v1561_v45 }
 0x161   : > { %1562 = vrcp.f32 %v574_v44 }
 0x162   : > { %1564 = vrcp.f32 %v581_v47 }
 0x16b   : > { %v1563_v49 = vpop.eup %1562 }
 0x16c   : > { %v591_v51 = vmul.f32 %v1563_v49, %v590_v48  ;;  %v1565_v53 = vpop.eup %1564 }
 0x16d   : > { %v594_v54 = vsub.f32 1.0, %v1565_v53  ;;  %v596_v57 = vmul.f32 %v1565_v53, %v1986_v24 }
 0x16e   : > { %v592_v52 = vadd.f32 %v591_v51, %v359_v50 }
 0x170   : > { %1566 = vtanh.f32 %v592_v52 }
 0x17a   : > { %v1567_v55 = vpop.eup %1566 }
 0x17b   : > { %v595_v56 = vmul.f32 %v1567_v55, %v594_v54 }
 0x17d   : > { %v2052_v58 = vadd.f32 %v596_v57, %v595_v56 }
 0x17f   : > { %v602_v59 = vpack.c.bf16 %v2052_v58, %v2052_v58 }
 0x181   : > { %636 = vmatmul.mubr.bf16.vlgmr.msra.gmra.mrb[4].mxu0 %v602_v59  ;;  %1382 = vmatmul.mubr.bf16.vlgmr.msra.gmra.mrb[4].mxu1 %v602_v59  ;;  %v1550_v59 = vld [vmem:[%s2235_s4] sm:$0xff]  }
 0x182   : > { %712 = vmatpush1.bf16.msra.mxu0 %v1918_v2  ;;  %1386 = vmatpush3.bf16.msra.mxu1 %v1941_v10 }
 0x183   : > { %713 = vmatprep.subr.bf16.mxu0 %v1923_v5  ;;  %1387 = vmatprep.subr.bf16.mxu1 %v1732_v3 }
 0x184   : > { %743 = vmatprep.mubr.bf16.mxu0 %v1733_v4  ;;  %1401 = vmatprep.mubr.msk.bf16.mxu1 %vm1734_vm0, %v1732_v3 }
 0x186   : > { %714 = vmatpush1.bf16.msra.mxu0 %v1928_v6  ;;  %1388 = vmatpush3.bf16.msra.mxu1 %v1951_v13 }
 0x187   : > { %715 = vmatprep.subr.bf16.mxu0 %v1932_v7  ;;  %1389 = vmatprep.subr.bf16.mxu1 %v1732_v3 }
 0x18a   : > { %716 = vmatpush1.bf16.msra.mxu0 %v1936_v8  ;;  %1390 = vmatpush3.bf16.msra.mxu1 %v1957_v15 }
 0x18b   : > { %717 = vmatprep.subr.bf16.mxu0 %v1939_v9  ;;  %1391 = vmatprep.subr.bf16.mxu1 %v1732_v3 }
 0x18e   : > { %718 = vmatpush1.bf16.msra.mxu0 %v1944_v11  ;;  %1392 = vmatpush3.bf16.msra.mxu1 %v1969_v19 }
 0x18f   : > { %719 = vmatprep.subr.bf16.mxu0 %v1948_v12  ;;  %1393 = vmatprep.subr.bf16.mxu1 %v1732_v3 }
 0x192   : > { %720 = vmatpush1.bf16.msra.mxu0 %v1953_v14  ;;  %1394 = vmatpush3.bf16.msra.mxu1 %v1975_v21 }
 0x193   : > { %721 = vmatprep.subr.bf16.mxu0 %v1960_v16  ;;  %1395 = vmatprep.subr.bf16.mxu1 %v1732_v3 }
 0x196   : > { %722 = vmatpush1.bf16.msra.mxu0 %v1963_v17  ;;  %1396 = vmatpush3.bf16.msra.mxu1 %v1989_v25 }
 0x197   : > { %723 = vmatprep.subr.bf16.mxu0 %v1965_v18  ;;  %1397 = vmatprep.subr.bf16.mxu1 %v1732_v3 }
 0x19a   : > { %724 = vmatpush1.bf16.msra.mxu0 %v1973_v20  ;;  %1398 = vmatpush3.bf16.msra.mxu1 %v1997_v27 }
 0x19b   : > { %725 = vmatprep.subr.bf16.mxu0 %v1980_v22  ;;  %1399 = vmatprep.subr.bf16.mxu1 %v1732_v3 }
 0x19e   : > { %726 = vmatpush1.bf16.msra.mxu0 %v1984_v23  ;;  %1400 = vmatpush3.bf16.msra.mxu1 %v2002_v28 }
 0x19f   : > { %819 = vmatprep.subr.bf16.mxu0 %v1916_v1  ;;  %1405 = vmatprep.subr.bf16.mxu1 %v1732_v3 }
 0x254   : > { %v637_v61 = vpop.f32.mrb[4].mxu0  ;;  %v678_v62 = vpop.f32.mrb[4].mxu1 }
 0x255   : > { %v684_v63 = vadd.f32 %v637_v61, %v599_v60  ;;  %v639_v24 = vpop.f32.mrb[5].mxu0  ;;  %v1383_v26 = vpop.f32.mrb[5].mxu1  ;;  %v698_v39 = vadd.f32 %v2047_v46, %v678_v62  ;;  %v1551_v60 = vld [vmem:[%s2235_s4 + $0x8] sm:$0xff]   ;;  %v1552_v61 = vld [vmem:[%s2235_s4 + $0x10] sm:$0xff]   ;;  %v1554_v62 = vld [vmem:[%s2235_s4 + $0x20] sm:$0xff]  }
 0x256   : > { %v641_v29 = vpop.f32.mrb[6].mxu0  ;;  %v681_v30 = vpop.f32.mrb[6].mxu1  ;;  %v691_v34 = vadd.f32 %v639_v24, %v600_v0  ;;  %v1556_v0 = vld [vmem:[%s2235_s4 + $0x30] sm:$0xff]   ;;  %v1557_v24 = vld [vmem:[%s2235_s4 + $0x38] sm:$0xff]   ;;  %v815_v26 = vld [vmem:[%s1895_s23 + $0x48] sm:$0xff] }
 0x257   : > { %v1280_v31 = vmul.f32 -1.442695, %v684_v63  ;;  %v642_v32 = vpop.f32.mrb[7].mxu0  ;;  %v1384_v33 = vpop.f32.mrb[7].mxu1  ;;  %v1555_v63 = vld [vmem:[%s2235_s4 + $0x28] sm:$0xff]  }
 0x258   : > { %v1281_v35 = vmul.f32 -1.442695, %v691_v34  ;;  %v816_v32 = vld [vmem:[%s1895_s23 + $0x50] sm:$0xff] }
 0x259   : > { %1568 = vpow2.f32 %v1280_v31 }
 0x25a   : > { %1570 = vpow2.f32 %v1281_v35 }
 0x263   : > { %v1569_v1 = vpop.eup %1568 }
 0x264   : > { %v688_v36 = vadd.f32 1.0, %v1569_v1  ;;  %v1571_v37 = vpop.eup %1570 }
 0x265   : > { %v695_v38 = vadd.f32 1.0, %v1571_v37 }
 0x266   : > { %1572 = vrcp.f32 %v688_v36 }
 0x267   : > { %1574 = vrcp.f32 %v695_v38 }
 0x270   : > { %v1573_v40 = vpop.eup %1572 }
 0x271   : > { %v699_v42 = vmul.f32 %v1573_v40, %v698_v39  ;;  %v1575_v44 = vpop.eup %1574 }
 0x272   : > { %v702_v45 = vsub.f32 1.0, %v1575_v44  ;;  %v704_v49 = vmul.f32 %v1575_v44, %v2052_v58 }
 0x273   : > { %v700_v43 = vadd.f32 %v699_v42, %v601_v41 }
 0x275   : > { %1576 = vtanh.f32 %v700_v43 }
 0x27f   : > { %v1577_v47 = vpop.eup %1576 }
 0x280   : > { %v703_v48 = vmul.f32 %v1577_v47, %v702_v45 }
 0x282   : > { %v2096_v50 = vadd.f32 %v704_v49, %v703_v48  ;;  %v817_v48 = vld [vmem:[%s1895_s23 + $0x58] sm:$0xff] }
 0x284   : > { %v710_v51 = vpack.c.bf16 %v2096_v50, %v2096_v50  ;;  %v928_v57 = vpack.c.bf16 %v2096_v50, %v2052_v58  ;;  %v1553_v58 = vld [vmem:[%s2235_s4 + $0x18] sm:$0xff]  }
 0x286   : > { %744 = vmatmul.mubr.bf16.vlgmr.msra.gmra.mrb[8].mxu0 %v710_v51  ;;  %1402 = vmatmul.mubr.bf16.vlgmr.msra.gmra.mrb[8].mxu1 %v710_v51 }
 0x287   : > { %820 = vmatpush1.bf16.msra.mxu0 %v1918_v2  ;;  %1406 = vmatpush3.bf16.msra.mxu1 %v1941_v10  ;;  %v707_v2 = vld [vmem:[%s1895_s23 + $0x30] sm:$0xff] }
 0x288   : > { %821 = vmatprep.subr.bf16.mxu0 %v1923_v5  ;;  %1407 = vmatprep.subr.bf16.mxu1 %v1732_v3 }
 0x289   : > { %851 = vmatprep.mubr.bf16.mxu0 %v1733_v4  ;;  %1421 = vmatprep.mubr.msk.bf16.mxu1 %vm1734_vm0, %v1732_v3 }
 0x28b   : > { %822 = vmatpush1.bf16.msra.mxu0 %v1928_v6  ;;  %1408 = vmatpush3.bf16.msra.mxu1 %v1951_v13 }
 0x28c   : > { %823 = vmatprep.subr.bf16.mxu0 %v1932_v7  ;;  %1409 = vmatprep.subr.bf16.mxu1 %v1732_v3  ;;  %v708_v7 = vld [vmem:[%s1895_s23 + $0x38] sm:$0xff] }
 0x28f   : > { %824 = vmatpush1.bf16.msra.mxu0 %v1936_v8  ;;  %1410 = vmatpush3.bf16.msra.mxu1 %v1957_v15 }
 0x290   : > { %825 = vmatprep.subr.bf16.mxu0 %v1939_v9  ;;  %1411 = vmatprep.subr.bf16.mxu1 %v1732_v3 }
 0x293   : > { %826 = vmatpush1.bf16.msra.mxu0 %v1944_v11  ;;  %1412 = vmatpush3.bf16.msra.mxu1 %v1969_v19 }
 0x294   : > { %827 = vmatprep.subr.bf16.mxu0 %v1948_v12  ;;  %1413 = vmatprep.subr.bf16.mxu1 %v1732_v3 }
 0x297   : > { %828 = vmatpush1.bf16.msra.mxu0 %v1953_v14  ;;  %1414 = vmatpush3.bf16.msra.mxu1 %v1975_v21 }
 0x298   : > { %829 = vmatprep.subr.bf16.mxu0 %v1960_v16  ;;  %1415 = vmatprep.subr.bf16.mxu1 %v1732_v3 }
 0x29b   : > { %830 = vmatpush1.bf16.msra.mxu0 %v1963_v17  ;;  %1416 = vmatpush3.bf16.msra.mxu1 %v1989_v25 }
 0x29c   : > { %831 = vmatprep.subr.bf16.mxu0 %v1965_v18  ;;  %1417 = vmatprep.subr.bf16.mxu1 %v1732_v3 }
 0x29f   : > { %832 = vmatpush1.bf16.msra.mxu0 %v1973_v20  ;;  %1418 = vmatpush3.bf16.msra.mxu1 %v1997_v27 }
 0x2a0   : > { %833 = vmatprep.subr.bf16.mxu0 %v1980_v22  ;;  %1419 = vmatprep.subr.bf16.mxu1 %v1732_v3  ;;  %v709_v22 = vld [vmem:[%s1895_s23 + $0x40] sm:$0xff]  ;;  %s1735_s23 = smov 127  }
 0x2a3   : > { %834 = vmatpush1.bf16.msra.mxu0 %v1984_v23  ;;  %1420 = vmatpush3.bf16.msra.mxu1 %v2002_v28 }
 0x2a4   : > { %1425 = vmatprep.subr.bf16.mxu0 %v1550_v59 }
 0x359   : > { %v745_v4 = vpop.f32.mrb[8].mxu0  ;;  %v786_v5 = vpop.f32.mrb[8].mxu1 }
 0x35a   : > { %v792_v6 = vadd.f32 %v745_v4, %v707_v2  ;;  %v747_v8 = vpop.f32.mrb[9].mxu0  ;;  %v1403_v9 = vpop.f32.mrb[9].mxu1  ;;  %v806_v20 = vadd.f32 %v2047_v46, %v786_v5 }
 0x35b   : > { %v749_v10 = vpop.f32.mrb[10].mxu0  ;;  %v789_v11 = vpop.f32.mrb[10].mxu1  ;;  %v799_v15 = vadd.f32 %v747_v8, %v708_v7 }
 0x35c   : > { %v1282_v12 = vmul.f32 -1.442695, %v792_v6  ;;  %v750_v13 = vpop.f32.mrb[11].mxu0  ;;  %v1404_v14 = vpop.f32.mrb[11].mxu1 }
 0x35d   : > { %v1283_v3 = vmul.f32 -1.442695, %v799_v15 }
 0x35e   : > { %1578 = vpow2.f32 %v1282_v12 }
 0x35f   : > { %1580 = vpow2.f32 %v1283_v3 }
 0x368   : > { %v1579_v16 = vpop.eup %1578 }
 0x369   : > { %v796_v17 = vadd.f32 1.0, %v1579_v16  ;;  %v1581_v18 = vpop.eup %1580  ;;  %v1736_v16 = vmov 1  }
 0x36a   : > { %v803_v19 = vadd.f32 1.0, %v1581_v18 }
 0x36b   : > { %1582 = vrcp.f32 %v796_v17 }
 0x36c   : > { %1584 = vrcp.f32 %v803_v19 }
 0x375   : > { %v1583_v21 = vpop.eup %1582 }
 0x376   : > { %v807_v23 = vmul.f32 %v1583_v21, %v806_v20  ;;  %v1585_v27 = vpop.eup %1584 }
 0x377   : > { %v810_v28 = vsub.f32 1.0, %v1585_v27  ;;  %v812_v54 = vmul.f32 %v1585_v27, %v2096_v50 }
 0x378   : > { %v808_v25 = vadd.f32 %v807_v23, %v709_v22 }
 0x37a   : > { %1586 = vtanh.f32 %v808_v25 }
 0x384   : > { %v1587_v52 = vpop.eup %1586 }
 0x385   : > { %v811_v53 = vmul.f32 %v1587_v52, %v810_v28 }
 0x387   : > { %v2138_v55 = vadd.f32 %v812_v54, %v811_v53 }
 0x389   : > { %v818_v56 = vpack.c.bf16 %v2138_v55, %v2138_v55 }
 0x38b   : > { %852 = vmatmul.mubr.bf16.vlgmr.msra.gmra.mrb[12].mxu0 %v818_v56  ;;  %1422 = vmatmul.mubr.bf16.vlgmr.msra.gmra.mrb[12].mxu1 %v818_v56 }
 0x38c   : > { %1441 = vmatprep.mubr.bf16.mxu0 %v928_v57  ;;  %1426 = vmatpush3.bf16.msra.mxu0 %v1550_v59 }
 0x38d   : > { %1427 = vmatprep.subr.bf16.mxu0 %v1551_v60 }
 0x390   : > { %1428 = vmatpush3.bf16.msra.mxu0 %v1551_v60 }
 0x391   : > { %1429 = vmatprep.subr.bf16.mxu0 %v1552_v61 }
 0x394   : > { %1430 = vmatpush3.bf16.msra.mxu0 %v1552_v61 }
 0x395   : > { %1431 = vmatprep.subr.bf16.mxu0 %v1553_v58 }
 0x398   : > { %1432 = vmatpush3.bf16.msra.mxu0 %v1553_v58 }
 0x399   : > { %1433 = vmatprep.subr.bf16.mxu0 %v1554_v62 }
 0x39c   : > { %1434 = vmatpush3.bf16.msra.mxu0 %v1554_v62 }
 0x39d   : > { %1435 = vmatprep.subr.bf16.mxu0 %v1555_v63 }
 0x3a0   : > { %1436 = vmatpush3.bf16.msra.mxu0 %v1555_v63 }
 0x3a1   : > { %1437 = vmatprep.subr.bf16.mxu0 %v1556_v0 }
 0x3a4   : > { %1438 = vmatpush3.bf16.msra.mxu0 %v1556_v0 }
 0x3a5   : > { %1439 = vmatprep.subr.bf16.mxu0 %v1557_v24 }
 0x3a8   : > { %1440 = vmatpush3.bf16.msra.mxu0 %v1557_v24 }
 0x45e   : > { %v853_v29 = vpop.f32.mrb[12].mxu0  ;;  %v894_v30 = vpop.f32.mrb[12].mxu1 }
 0x45f   : > { %v900_v31 = vadd.f32 %v853_v29, %v815_v26  ;;  %v855_v33 = vpop.f32.mrb[13].mxu0  ;;  %v1423_v34 = vpop.f32.mrb[13].mxu1  ;;  %v914_v45 = vadd.f32 %v2047_v46, %v894_v30  ;;  %v1286_v46 = vld [vmem:[%s2236_s5] ss:$0 sm:$0xff] }
 0x460   : > { %v857_v35 = vpop.f32.mrb[14].mxu0  ;;  %v897_v1 = vpop.f32.mrb[14].mxu1  ;;  %v907_v39 = vadd.f32 %v855_v33, %v816_v32 }
 0x461   : > { %v1284_v36 = vmul.f32 -1.442695, %v900_v31  ;;  %v858_v37 = vpop.f32.mrb[15].mxu0  ;;  %v1424_v38 = vpop.f32.mrb[15].mxu1 }
 0x462   : > { %v1285_v40 = vmul.f32 -1.442695, %v907_v39 }
 0x463   : > { %1588 = vpow2.f32 %v1284_v36 }
 0x464   : > { %1590 = vpow2.f32 %v1285_v40 }
 0x46d   : > { %v1589_v41 = vpop.eup %1588 }
 0x46e   : > { %v904_v42 = vadd.f32 1.0, %v1589_v41  ;;  %v1591_v43 = vpop.eup %1590 }
 0x46f   : > { %v911_v44 = vadd.f32 1.0, %v1591_v43 }
 0x470   : > { %1592 = vrcp.f32 %v904_v42 }
 0x471   : > { %1594 = vrcp.f32 %v911_v44 }
 0x47a   : > { %v1593_v47 = vpop.eup %1592 }
 0x47b   : > { %v915_v49 = vmul.f32 %v1593_v47, %v914_v45  ;;  %v1595_v51 = vpop.eup %1594 }
 0x47c   : > { %v918_v2 = vsub.f32 1.0, %v1595_v51  ;;  %v920_v6 = vmul.f32 %v1595_v51, %v2138_v55 }
 0x47d   : > { %v916_v50 = vadd.f32 %v915_v49, %v817_v48 }
 0x47f   : > { %1596 = vtanh.f32 %v916_v50 }
 0x489   : > { %v1597_v4 = vpop.eup %1596 }
 0x48a   : > { %v919_v5 = vmul.f32 %v1597_v4, %v918_v2 }
 0x48c   : > { %v921_v7 = vadd.f32 %v920_v6, %v919_v5 }
 0x48e   : > { %v929_v8 = vpack.c.bf16 %v921_v7, %v2138_v55  ;;  %923 = vst [vmem:[#allocation8] sm:$0xff] %v921_v7 }
 0x490   : > { %1442 = vmatmul.mubr.bf16.vlgmr.msra.gmra.mrb[16].mxu0 %v929_v8 }
 0x563   : > { %v1443_v9 = vpop.f32.mrb[16].mxu0 }
 0x564   : > { %v2177_v10 = vadd.f32 %v1443_v9, %v1286_v46  ;;  %v1035_v11 = vpop.f32.mrb[17].mxu0 }
 0x565   : > { %v1036_v12 = vadd.f32 %v1286_v46, %v1035_v11  ;;  %v1444_v13 = vpop.f32.mrb[18].mxu0 }
 0x566   : > { %1058 = vrot.lane.b32.xlu1 %v2177_v10, %s1735_s23  ;;  %v1038_v14 = vpop.f32.mrb[19].mxu0  ;;  %v1047_v15 = vadd.f32 %v1444_v13, %v1286_v46 }
 0x567   : > { %1054 = vrot.lane.b32.xlu0 %v1036_v12, %s1735_s23  ;;  %v1039_v3 = vadd.f32 %v1286_v46, %v1038_v14 }
 0x56a   : > { %1060 = vrot.lane.b32.xlu1 %v1047_v15, %s1735_s23 }
 0x56b   : > { %1056 = vrot.lane.b32.xlu0 %v1039_v3, %s1735_s23 }
 0x56e   : > { %1083 = vperm.xlu1 %1515, %v2177_v10  }
 0x56f   : > { %1075 = vperm.xlu0 %1514, %v1036_v12  }
 0x572   : > { %1087 = vperm.xlu1 %1515, %v1047_v15  }
 0x573   : > { %1516 = vset.pattern.permute.xlu0 %v1736_v16 }
 0x576   : > { %1079 = vperm.xlu1 %1515, %v1039_v3  }
 0x57a   : > { %1517 = vset.pattern.permute.xlu1 %v1736_v16 }
 0x5d8   : > { %v1059_v17 = vpop.permute.xlu1 %1058 }
 0x5d9   : > { %v1055_v18 = vpop.permute.xlu0 %1054  ;;  %v1068_v20 = vadd.f32 %v1059_v17, %v2177_v10 }
 0x5da   : > { %v1066_v19 = vadd.f32 %v1055_v18, %v1036_v12 }
 0x5db   : > { %v1072_v27 = vmul.f32 0.5, %v1068_v20 }
 0x5dc   : > { %v1070_v21 = vmul.f32 0.5, %v1066_v19  ;;  %v1061_v22 = vpop.permute.xlu1 %1060 }
 0x5dd   : > { %v1057_v23 = vpop.permute.xlu0 %1056  ;;  %v1069_v28 = vadd.f32 %v1061_v22, %v1047_v15 }
 0x5de   : > { %v1067_v25 = vadd.f32 %v1057_v23, %v1039_v3  ;;  %1096 = vperm.xlu0 %1516, %v1070_v21  }
 0x5df   : > { %v1073_v53 = vmul.f32 0.5, %v1069_v28 }
 0x5e0   : > { %v1071_v52 = vmul.f32 0.5, %v1067_v25 }
 0x5e2   : > { %1106 = vperm.xlu0 %1516, %v1072_v27   ;;  %1101 = vperm.xlu1 %1517, %v1071_v52  }
 0x5e6   : > { %1111 = vperm.xlu1 %1517, %v1073_v53  }
 0x5ed   : > { %v1084_v54 = vpop.permute.xlu1 %1083 }
 0x5ee   : > { %v1076_v56 = vpop.permute.xlu0 %1075 }
 0x5f1   : > { %v1088_v55 = vpop.permute.xlu1 %1087 }
 0x5f2   : > { %1669 = shalt.err (!%p1666_p2)
}
 0x5f3   : > { %s1670_s22 = scalar_lea.hbm %s2238_s7, 128 }
 0x5f4   : > { %p1671_p11 = scmp.ne.s32.totalorder %s2238_s7, %s1670_s22  ;;  %p1676_p6 = scmp.lt.u32.totalorder %s1670_s22, %s2238_s7 }
 0x5f6   : > { %p1672_p13 = pnand %p1671_p11, %p1469_p10 }
 0x5f8   : > { %p1673_p3 = pneg %p1672_p13 }
 0x5fa   : > { %p1678_p7 = pnand %p1676_p6, %p1673_p3 }
 0x5fc   : > { %1681 = shalt.err (!%p1678_p7)
}
 0x5fd   : > { %1455 = dma.vmem_to_hbm [thread:$0]  (%p1469_p10), %s1156_s10, 128, %s2238_s7, [#allocation5]   ;;  %v1090_v57 = vadd.f32 %v1076_v56, %v1036_v12  ;;  %v1080_v59 = vpop.permute.xlu1 %1079  ;;  %v1092_v58 = vadd.f32 %v1084_v54, %v2177_v10  ;;  %v1093_v29 = vadd.f32 %v1088_v55, %v1047_v15  ;;  %vm1134_vm1 = vcmask 15360  }
 0x5fe   : > { %v1091_v62 = vadd.f32 %v1080_v59, %v1039_v3 }
 0x65d   : > { %v1097_v60 = vpop.permute.xlu0 %1096 }
 0x65e   : > { %v1114_v61 = vsub.f32 %v1090_v57, %v1097_v60 }
 0x660   : > { %1122 = vrot.lane.b32.xlu0 %v1114_v61, %s1735_s23 }
 0x661   : > { %v1102_v63 = vpop.permute.xlu1 %1101  ;;  %v1107_v0 = vpop.permute.xlu0 %1106 }
 0x662   : > { %v1115_v24 = vsub.f32 %v1091_v62, %v1102_v63  ;;  %v1116_v26 = vsub.f32 %v1092_v58, %v1107_v0 }
 0x664   : > { %1124 = vrot.lane.b32.xlu1 %v1115_v24, %s1735_s23  ;;  %1126 = vrot.lane.b32.xlu0 %v1116_v26, %s1735_s23 }
 0x665   : > { %v1112_v30 = vpop.permute.xlu1 %1111 }
 0x666   : > { %v1117_v31 = vsub.f32 %v1093_v29, %v1112_v30 }
 0x668   : > { %1128 = vrot.lane.b32.xlu1 %v1117_v31, %s1735_s23 }
 0x6d2   : > { %v1123_v32 = vpop.permute.xlu0 %1122 }
 0x6d3   : > { %1135 = vst.msk [vmem:[%s1909_s27] sm:$0xff] %vm1134_vm1, %v1123_v32 }
 0x6d6   : > { %v1125_v33 = vpop.permute.xlu1 %1124  ;;  %v1127_v34 = vpop.permute.xlu0 %1126 }
 0x6d7   : > { %1136 = vst.msk [vmem:[%s1909_s27 + $0x8] sm:$0xff] %vm1134_vm1, %v1125_v33  ;;  %1137 = vst.msk [vmem:[%s1909_s27 + $0x10] sm:$0xff] %vm1134_vm1, %v1127_v34 }
 0x6da   : > { %v1129_v35 = vpop.permute.xlu1 %1128 }
 0x6db   : > { %1138 = vst.msk [vmem:[%s1909_s27 + $0x18] sm:$0xff] %vm1134_vm1, %v1129_v35 }
 0x6dc   : > { %1707 = dma.done.wait (%p1469_p10), [#allocation5], 128  }
 0x6dd   : > { %1709 = vsyncadd (%p1469_p10), [#allocation5], 4294967168 }
 0x6de PF: > { %p20_p9 = scmp.ge.s32.totalorder %s1823_s11, 4   ;;  %s2251_s24 = smov %s1716_s25 }
 0x6df   : > { %s2252_s25 = smov %s1720_s26  ;;  %s2253_s26 = smov %s1849_s14 }
 0x6e0   : > { %s2254_s27 = smov %s1823_s11  ;;  %22 = sbr.rel (!%p20_p9) target bundleno = 5 (0x5), region = 101 }
 0x6e7   :  { %1176 = vsyncpa [#allocation4], 1 }
 0x6e8   :  { %1178 = vsyncpa [#allocation4 + $0x1], 1 }
 0x6e9   :  { %1179 = vsyncpa [#allocation7], 1 }
 0x6ea   :  { %1180 = vsyncpa [#allocation5], 1 }
 0x6eb   :  { %1182 = vsyncpa [#allocation5 + $0x1], 1 }

</bundles_post_ra>
